<compile_context>
chip_gen: v7x
topology: tpu7x:2x2x1
jax: 0.10.0
libtpu: 0.0.40
codegen_flags: <defaults>
</compile_context>

<pallas_src>
import jax
import jax.numpy as jnp
from jax.experimental import pallas as pl
from jax.experimental.pallas import tpu as pltpu


def _round_up(n, m):
    return ((n + m - 1) // m) * m


def _device_kind():
    try:
        return jax.devices()[0].device_kind.lower()
    except Exception:
        return ""


def _mxu_lane_multiple():
    # v2-v5: 128x128 MXU passes; v6e/v7x: 256x256.
    kind = _device_kind()
    if any(t in kind for t in ("v2", "v3", "v4", "v5")):
        return 128
    return 256


def _vmem_cap_bytes():
    # How much scoped VMEM we are willing to claim via vmem_limit_bytes.
    kind = _device_kind()
    if "v7" in kind:
        return 48 << 20      # 64 MiB per TensorCore on v7x -> leave headroom
    return 96 << 20          # 128 MiB physical on v5e / v6e


def _pad_dim(d, mxu_mult):
    # Lane-dense padding: 128 for small dims; full 256 MXU tile on v6e/v7x
    # once the dim is already >= 256.
    if mxu_mult == 256 and d >= 256:
        return _round_up(d, 256)
    return _round_up(d, 128)


# ----------------------------------------------------------------------------
# Kernels
# ----------------------------------------------------------------------------

def _mlp_kernel_resident(x_ref, w1_ref, b1_ref, w2_ref, b2_ref, o_ref):
    """Both (padded) weight matrices are fully VMEM-resident."""
    x = x_ref[...].astype(w1_ref.dtype)                                   # in-kernel cast
    h = jnp.dot(x, w1_ref[...], preferred_element_type=jnp.float32)      # MXU, f32 accum
    h = jnp.maximum(h + b1_ref[...], 0.0)                                 # f32 bias + ReLU
    y = jnp.dot(h.astype(w2_ref.dtype), w2_ref[...],
                preferred_element_type=jnp.float32)                       # MXU, f32 accum
    o_ref[...] = jax.nn.sigmoid(y + b2_ref[...]).astype(o_ref.dtype)      # EUP sigmoid


def _mlp_kernel_htiled(x_ref, w1_ref, b1_ref, w2_ref, b2_ref, o_ref, acc_ref):
    """Fallback: hidden dim tiled (grid axis 1), f32 accumulator for layer 2."""
    j = pl.program_id(1)

    @pl.when(j == 0)
    def _():
        acc_ref[...] = jnp.zeros_like(acc_ref)

    x = x_ref[...].astype(w1_ref.dtype)
    h = jnp.dot(x, w1_ref[...], preferred_element_type=jnp.float32)
    h = jnp.maximum(h + b1_ref[...], 0.0)
    acc_ref[...] += jnp.dot(h.astype(w2_ref.dtype), w2_ref[...],
                            preferred_element_type=jnp.float32)

    @pl.when(j == pl.num_programs(1) - 1)
    def _():
        o_ref[...] = jax.nn.sigmoid(acc_ref[...] + b2_ref[...]).astype(o_ref.dtype)


# ----------------------------------------------------------------------------
# Module wrapper (weights prepared once, forward = one pallas_call + slice)
# ----------------------------------------------------------------------------

class PallasMLP:
    """x @ W1 + b1 -> ReLU -> @ W2 + b2 -> Sigmoid.

    Weights are stored pre-transposed ([in, out]), padded to lane-dense shapes
    and cast to the matmul dtype once at construction.
    """

    def __init__(self, w1, b1, w2, b2, *, matmul_dtype=jnp.bfloat16, tb_max=1024):
        self.d_in, self.hidden = int(w1.shape[0]), int(w1.shape[1])
        self.d_out = int(w2.shape[1])
        self.matmul_dtype = matmul_dtype
        self.tb_max = int(tb_max)

        mult = _mxu_lane_multiple()
        self.vmem_cap = _vmem_cap_bytes()
        wbytes = jnp.dtype(matmul_dtype).itemsize

        h_p = _pad_dim(self.hidden, mult)
        dout_p = _pad_dim(self.d_out, mult)

        # Resident-weight footprint (single-buffered): W1, W2 (matmul dtype) + f32 biases.
        resident_bytes = (self.d_in * h_p + h_p * dout_p) * wbytes + (h_p + dout_p) * 4
        weight_budget = int(self.vmem_cap * 0.6)
        self.use_resident = resident_bytes <= weight_budget

        if self.use_resident:
            self.th = h_p
        else:
            # Tile the hidden dim: double-buffered (d_in x TH) and (TH x dout_p)
            # weight slabs must fit the weight budget.
            per_col = 2 * (self.d_in + dout_p) * wbytes + 2 * 4
            th = max(mult, (weight_budget // per_col) // mult * mult)
            self.th = int(min(th, _round_up(self.hidden, mult)))
            h_p = _round_up(self.hidden, self.th)   # make H_p a multiple of TH

        self.h_p = int(h_p)
        self.dout_p = int(dout_p)
        self._resident_bytes = int(resident_bytes)
        self._single_buffer_ok = None   # decided on first call (pl.Buffered(1) support)

        f32 = jnp.float32
        self.w1p = (jnp.zeros((self.d_in, self.h_p), matmul_dtype)
                    .at[:, :self.hidden].set(w1.astype(matmul_dtype)))
        self.w2p = (jnp.zeros((self.h_p, self.dout_p), matmul_dtype)
                    .at[:self.hidden, :self.d_out].set(w2.astype(matmul_dtype)))
        self.b1p = (jnp.zeros((1, self.h_p), f32)
                    .at[:, :self.hidden].set(b1.astype(f32).reshape(1, self.hidden)))
        self.b2p = (jnp.zeros((1, self.dout_p), f32)
                    .at[:, :self.d_out].set(b2.astype(f32).reshape(1, self.d_out)))

    # ------------------------------------------------------------------ call
    def __call__(self, x):
        if x.ndim != 2 or x.shape[1] != self.d_in:
            raise ValueError(f"expected x of shape [B, {self.d_in}], got {x.shape}")
        if self._single_buffer_ok is None:
            try:
                out = jax.block_until_ready(self._run(x, single_buffer=True))
                self._single_buffer_ok = True
            except Exception:
                # Installed JAX rejected pl.Buffered(1); fall back to defaults.
                self._single_buffer_ok = False
                out = self._run(x, single_buffer=False)
        else:
            out = self._run(x, single_buffer=self._single_buffer_ok)
        return out[:, :self.d_out]

    # ------------------------------------------------------------------ impl
    def _run(self, x, *, single_buffer):
        B = int(x.shape[0])
        out_dtype = x.dtype
        out_isize = jnp.dtype(out_dtype).itemsize
        x_isize = jnp.dtype(x.dtype).itemsize
        wbytes = jnp.dtype(self.matmul_dtype).itemsize

        maybe_sb = dict(pipeline_mode=pl.Buffered(1)) if single_buffer else {}

        if self.use_resident:
            weights_vmem = self._resident_bytes * (1 if single_buffer else 2)
            per_row = 2 * self.d_in * x_isize + 2 * self.dout_p * out_isize
            budget = max(self.vmem_cap - weights_vmem - (8 << 20), 1 << 20)
            tb = min(self.tb_max, _round_up(B, 8),
                     max(8, (budget // per_row) // 8 * 8))
            grid = (pl.cdiv(B, tb),)

            in_specs = [
                pl.BlockSpec((tb, self.d_in), lambda i: (i, 0)),              # x: batch-tiled
                pl.BlockSpec((self.d_in, self.h_p), lambda i: (0, 0), **maybe_sb),
                pl.BlockSpec((1, self.h_p), lambda i: (0, 0), **maybe_sb),
                pl.BlockSpec((self.h_p, self.dout_p), lambda i: (0, 0), **maybe_sb),
                pl.BlockSpec((1, self.dout_p), lambda i: (0, 0), **maybe_sb),
            ]
            out_specs = pl.BlockSpec((tb, self.dout_p), lambda i: (i, 0))
            scratch_shapes = ()
            kernel = _mlp_kernel_resident
            dim_sem = ("parallel",)
            vmem_needed = weights_vmem + tb * per_row
        else:
            nh = self.h_p // self.th
            weights_vmem = (2 * (self.d_in * self.th + self.th * self.dout_p) * wbytes
                            + 2 * self.th * 4 + self.dout_p * 4)
            per_row = (2 * self.d_in * x_isize + 2 * self.dout_p * out_isize
                       + self.dout_p * 4)                                     # + f32 acc
            budget = max(self.vmem_cap - weights_vmem - (8 << 20), 1 << 20)
            tb = min(self.tb_max, _round_up(B, 8),
                     max(8, (budget // per_row) // 8 * 8))
            grid = (pl.cdiv(B, tb), nh)

            in_specs = [
                pl.BlockSpec((tb, self.d_in), lambda i, j: (i, 0)),
                pl.BlockSpec((self.d_in, self.th), lambda i, j: (0, j)),
                pl.BlockSpec((1, self.th), lambda i, j: (0, j)),
                pl.BlockSpec((self.th, self.dout_p), lambda i, j: (j, 0)),
                pl.BlockSpec((1, self.dout_p), lambda i, j: (0, 0), **maybe_sb),
            ]
            out_specs = pl.BlockSpec((tb, self.dout_p), lambda i, j: (i, 0))
            scratch_shapes = [pltpu.VMEM((tb, self.dout_p), jnp.float32)]
            kernel = _mlp_kernel_htiled
            dim_sem = ("parallel", "arbitrary")
            vmem_needed = weights_vmem + tb * per_row

        vmem_limit = int(min(self.vmem_cap,
                             max(32 << 20, vmem_needed + vmem_needed // 2 + (4 << 20))))

        flops = 2 * B * self.d_in * self.h_p + 2 * B * self.h_p * self.dout_p
        bytes_accessed = (x.size * x_isize
                          + self.w1p.size * wbytes + self.w2p.size * wbytes
                          + self.b1p.size * 4 + self.b2p.size * 4
                          + B * self.dout_p * out_isize)
        cost = pl.CostEstimate(flops=flops, transcendentals=B * self.dout_p,
                               bytes_accessed=bytes_accessed)

        return pl.pallas_call(
            kernel,
            out_shape=jax.ShapeDtypeStruct((B, self.dout_p), out_dtype),
            grid=grid,
            in_specs=in_specs,
            out_specs=out_specs,
            scratch_shapes=scratch_shapes,
            compiler_params=pltpu.CompilerParams(
                dimension_semantics=dim_sem,
                vmem_limit_bytes=vmem_limit,
            ),
            cost_estimate=cost,
        )(x, self.w1p, self.b1p, self.w2p, self.b2p)


# ----------------------------------------------------------------------------
# Param init (matches torch.nn.Linear default: U(-1/sqrt(fan_in), +1/sqrt(fan_in)))
# ----------------------------------------------------------------------------

def init_params(key, input_dim, hidden_dim, output_dim, dtype=jnp.float32):
    k1, k2, k3, k4 = jax.random.split(key, 4)
    bound1 = 1.0 / (input_dim ** 0.5)
    bound2 = 1.0 / (hidden_dim ** 0.5)
    w1 = jax.random.uniform(k1, (input_dim, hidden_dim), dtype, -bound1, bound1)
    b1 = jax.random.uniform(k2, (hidden_dim,), dtype, -bound1, bound1)
    w2 = jax.random.uniform(k3, (hidden_dim, output_dim), dtype, -bound2, bound2)
    b2 = jax.random.uniform(k4, (output_dim,), dtype, -bound2, bound2)
    return w1, b1, w2, b2


if __name__ == "__main__":
    # Small shapes consistent with the module: batch=8, input_dim=32, hidden_dim=64, output_dim=16
    batch, input_dim, hidden_dim, output_dim = 8, 32, 64, 16

    key = jax.random.PRNGKey(0)
    kx, kp = jax.random.split(key)
    x = jax.random.normal(kx, (batch, input_dim), jnp.float32)
    w1, b1, w2, b2 = init_params(kp, input_dim, hidden_dim, output_dim)

    model = PallasMLP(w1, b1, w2, b2)
    out = jax.block_until_ready(model(x))

    # Pure-JAX f32 reference. Matmul operands are bf16 in the kernel (f32 accum),
    # so use a tolerance appropriate for bf16 inputs.
    ref = jax.nn.sigmoid(jnp.maximum(x @ w1 + b1[None, :], 0.0) @ w2 + b2[None, :])
    assert out.shape == (batch, output_dim)
    assert jnp.allclose(out, ref, atol=2e-2, rtol=2e-2), float(jnp.max(jnp.abs(out - ref)))

    print("KERNEL_OK")
</pallas_src>

<mosaic_0001>
module attributes {stable_mosaic.version = 11 : i64} {
  func.func @_mlp_kernel_resident(%arg0: i32, %arg1: memref<8x32xf32, #tpu.memory_space<vmem>>, %arg2: memref<32x128xbf16, #tpu.memory_space<vmem>>, %arg3: memref<1x128xf32, #tpu.memory_space<vmem>>, %arg4: memref<128x128xbf16, #tpu.memory_space<vmem>>, %arg5: memref<1x128xf32, #tpu.memory_space<vmem>>, %arg6: memref<8x128xf32, #tpu.memory_space<vmem>>) attributes {dimension_semantics = [#tpu.dimension_semantics<parallel>], iteration_bounds = array<i64: 1>, scalar_prefetch = 0 : i64, scratch_operands = 0 : i64, tpu.core_type = #tpu.core_type<tc>, window_params = [{transform_indices = @transform_0, window_bounds = array<i64: 8, 32>}, {pipeline_mode = #tpu.pipeline_mode<synchronous>, transform_indices = @transform_1, window_bounds = array<i64: 32, 128>}, {pipeline_mode = #tpu.pipeline_mode<synchronous>, transform_indices = @transform_2, window_bounds = array<i64: 1, 128>}, {pipeline_mode = #tpu.pipeline_mode<synchronous>, transform_indices = @transform_3, window_bounds = array<i64: 128, 128>}, {pipeline_mode = #tpu.pipeline_mode<synchronous>, transform_indices = @transform_4, window_bounds = array<i64: 1, 128>}, {transform_indices = @transform_5, window_bounds = array<i64: 8, 128>}]} {
    %c0 = arith.constant 0 : index
    %c0_0 = arith.constant 0 : index
    %0 = vector.load %arg1[%c0, %c0_0] : memref<8x32xf32, #tpu.memory_space<vmem>>, vector<8x32xf32>
    %1 = arith.truncf %0 : vector<8x32xf32> to vector<8x32xbf16>
    %c0_1 = arith.constant 0 : index
    %c0_2 = arith.constant 0 : index
    %2 = vector.load %arg2[%c0_1, %c0_2] : memref<32x128xbf16, #tpu.memory_space<vmem>>, vector<32x128xbf16>
    %cst = arith.constant dense<0.000000e+00> : vector<8x128xf32>
    %3 = tpu.matmul %1, %2, %cst {dimension_numbers = #tpu.dot_dimension_numbers<[1], [0], [0], [1], [0, 0, 1, 1], [], []>} : vector<8x32xbf16>, vector<32x128xbf16>, vector<8x128xf32> -> vector<8x128xf32>
    %c0_3 = arith.constant 0 : index
    %c0_4 = arith.constant 0 : index
    %4 = vector.load %arg3[%c0_3, %c0_4] : memref<1x128xf32, #tpu.memory_space<vmem>>, vector<1x128xf32>
    %5 = vector.broadcast %4 : vector<1x128xf32> to vector<8x128xf32>
    %6 = arith.addf %3, %5 : vector<8x128xf32>
    %cst_5 = arith.constant 0.000000e+00 : f32
    %7 = vector.broadcast %cst_5 : f32 to vector<8x128xf32>
    %8 = arith.maximumf %6, %7 : vector<8x128xf32>
    %9 = arith.truncf %8 : vector<8x128xf32> to vector<8x128xbf16>
    %c0_6 = arith.constant 0 : index
    %c0_7 = arith.constant 0 : index
    %10 = vector.load %arg4[%c0_6, %c0_7] : memref<128x128xbf16, #tpu.memory_space<vmem>>, vector<128x128xbf16>
    %cst_8 = arith.constant dense<0.000000e+00> : vector<8x128xf32>
    %11 = tpu.matmul %9, %10, %cst_8 {dimension_numbers = #tpu.dot_dimension_numbers<[1], [0], [0], [1], [0, 0, 1, 1], [], []>} : vector<8x128xbf16>, vector<128x128xbf16>, vector<8x128xf32> -> vector<8x128xf32>
    %c0_9 = arith.constant 0 : index
    %c0_10 = arith.constant 0 : index
    %12 = vector.load %arg5[%c0_9, %c0_10] : memref<1x128xf32, #tpu.memory_space<vmem>>, vector<1x128xf32>
    %13 = vector.broadcast %12 : vector<1x128xf32> to vector<8x128xf32>
    %14 = arith.addf %11, %13 : vector<8x128xf32>
    %15 = arith.negf %14 : vector<8x128xf32>
    %16 = math.exp %15 : vector<8x128xf32>
    %cst_11 = arith.constant 1.000000e+00 : f32
    %17 = vector.broadcast %cst_11 : f32 to vector<8x128xf32>
    %18 = arith.addf %17, %16 : vector<8x128xf32>
    %19 = arith.divf %17, %18 : vector<8x128xf32>
    %c0_12 = arith.constant 0 : index
    %c0_13 = arith.constant 0 : index
    %20 = vector.load %arg6[%c0_12, %c0_13] : memref<8x128xf32, #tpu.memory_space<vmem>>, vector<8x128xf32>
    tpu.vector_store %arg6[%c0_12, %c0_13], %19 {strides = array<i32>} : memref<8x128xf32, #tpu.memory_space<vmem>>, vector<8x128xf32>,
    return
  }
  func.func @transform_0(%arg0: i32) -> (i32, i32) {
    %c0_i32 = arith.constant 0 : i32
    %c0_i32_0 = arith.constant 0 : i32
    return %arg0, %c0_i32 : i32, i32
  }
  func.func @transform_1(%arg0: i32) -> (i32, i32) {
    %c0_i32 = arith.constant 0 : i32
    %c0_i32_0 = arith.constant 0 : i32
    %c0_i32_1 = arith.constant 0 : i32
    return %c0_i32, %c0_i32_0 : i32, i32
  }
  func.func @transform_2(%arg0: i32) -> (i32, i32) {
    %c0_i32 = arith.constant 0 : i32
    %c0_i32_0 = arith.constant 0 : i32
    %c0_i32_1 = arith.constant 0 : i32
    return %c0_i32, %c0_i32_0 : i32, i32
  }
  func.func @transform_3(%arg0: i32) -> (i32, i32) {
    %c0_i32 = arith.constant 0 : i32
    %c0_i32_0 = arith.constant 0 : i32
    %c0_i32_1 = arith.constant 0 : i32
    return %c0_i32, %c0_i32_0 : i32, i32
  }
  func.func @transform_4(%arg0: i32) -> (i32, i32) {
    %c0_i32 = arith.constant 0 : i32
    %c0_i32_0 = arith.constant 0 : i32
    %c0_i32_1 = arith.constant 0 : i32
    return %c0_i32, %c0_i32_0 : i32, i32
  }
  func.func @transform_5(%arg0: i32) -> (i32, i32) {
    %c0_i32 = arith.constant 0 : i32
    %c0_i32_0 = arith.constant 0 : i32
    return %arg0, %c0_i32 : i32, i32
  }
}

module attributes {stable_mosaic.version = 11 : i64} {
  func.func @_mlp_kernel_resident(%arg0: i32, %arg1: memref<8x32xf32, #tpu.memory_space<vmem>>, %arg2: memref<32x128xbf16, #tpu.memory_space<vmem>>, %arg3: memref<1x128xf32, #tpu.memory_space<vmem>>, %arg4: memref<128x128xbf16, #tpu.memory_space<vmem>>, %arg5: memref<1x128xf32, #tpu.memory_space<vmem>>, %arg6: memref<8x128xf32, #tpu.memory_space<vmem>>) attributes {dimension_semantics = [#tpu.dimension_semantics<parallel>], iteration_bounds = array<i64: 1>, scalar_prefetch = 0 : i64, scratch_operands = 0 : i64, tpu.core_type = #tpu.core_type<tc>, window_params = [{transform_indices = @transform_0, window_bounds = array<i64: 8, 32>}, {pipeline_mode = #tpu.pipeline_mode<synchronous>, transform_indices = @transform_1, window_bounds = array<i64: 32, 128>}, {pipeline_mode = #tpu.pipeline_mode<synchronous>, transform_indices = @transform_2, window_bounds = array<i64: 1, 128>}, {pipeline_mode = #tpu.pipeline_mode<synchronous>, transform_indices = @transform_3, window_bounds = array<i64: 128, 128>}, {pipeline_mode = #tpu.pipeline_mode<synchronous>, transform_indices = @transform_4, window_bounds = array<i64: 1, 128>}, {transform_indices = @transform_5, window_bounds = array<i64: 8, 128>}]} {
    %c0 = arith.constant 0 : index
    %c0_0 = arith.constant 0 : index
    %0 = vector.load %arg1[%c0, %c0_0] : memref<8x32xf32, #tpu.memory_space<vmem>>, vector<8x32xf32>
    %1 = arith.truncf %0 : vector<8x32xf32> to vector<8x32xbf16>
    %c0_1 = arith.constant 0 : index
    %c0_2 = arith.constant 0 : index
    %2 = vector.load %arg2[%c0_1, %c0_2] : memref<32x128xbf16, #tpu.memory_space<vmem>>, vector<32x128xbf16>
    %cst = arith.constant dense<0.000000e+00> : vector<8x128xf32>
    %3 = tpu.matmul %1, %2, %cst {dimension_numbers = #tpu.dot_dimension_numbers<[1], [0], [0], [1], [0, 0, 1, 1], [], []>} : vector<8x32xbf16>, vector<32x128xbf16>, vector<8x128xf32> -> vector<8x128xf32>
    %c0_3 = arith.constant 0 : index
    %c0_4 = arith.constant 0 : index
    %4 = vector.load %arg3[%c0_3, %c0_4] : memref<1x128xf32, #tpu.memory_space<vmem>>, vector<1x128xf32>
    %5 = vector.broadcast %4 : vector<1x128xf32> to vector<8x128xf32>
    %6 = arith.addf %3, %5 : vector<8x128xf32>
    %cst_5 = arith.constant 0.000000e+00 : f32
    %7 = vector.broadcast %cst_5 : f32 to vector<8x128xf32>
    %8 = arith.maximumf %6, %7 : vector<8x128xf32>
    %9 = arith.truncf %8 : vector<8x128xf32> to vector<8x128xbf16>
    %c0_6 = arith.constant 0 : index
    %c0_7 = arith.constant 0 : index
    %10 = vector.load %arg4[%c0_6, %c0_7] : memref<128x128xbf16, #tpu.memory_space<vmem>>, vector<128x128xbf16>
    %cst_8 = arith.constant dense<0.000000e+00> : vector<8x128xf32>
    %11 = tpu.matmul %9, %10, %cst_8 {dimension_numbers = #tpu.dot_dimension_numbers<[1], [0], [0], [1], [0, 0, 1, 1], [], []>} : vector<8x128xbf16>, vector<128x128xbf16>, vector<8x128xf32> -> vector<8x128xf32>
    %c0_9 = arith.constant 0 : index
    %c0_10 = arith.constant 0 : index
    %12 = vector.load %arg5[%c0_9, %c0_10] : memref<1x128xf32, #tpu.memory_space<vmem>>, vector<1x128xf32>
    %13 = vector.broadcast %12 : vector<1x128xf32> to vector<8x128xf32>
    %14 = arith.addf %11, %13 : vector<8x128xf32>
    %15 = arith.negf %14 : vector<8x128xf32>
    %16 = math.exp %15 : vector<8x128xf32>
    %cst_11 = arith.constant 1.000000e+00 : f32
    %17 = vector.broadcast %cst_11 : f32 to vector<8x128xf32>
    %18 = arith.addf %17, %16 : vector<8x128xf32>
    %19 = arith.divf %17, %18 : vector<8x128xf32>
    %c0_12 = arith.constant 0 : index
    %c0_13 = arith.constant 0 : index
    %20 = vector.load %arg6[%c0_12, %c0_13] : memref<8x128xf32, #tpu.memory_space<vmem>>, vector<8x128xf32>
    tpu.vector_store %arg6[%c0_12, %c0_13], %19 {strides = array<i32>} : memref<8x128xf32, #tpu.memory_space<vmem>>, vector<8x128xf32>,
    return
  }
  func.func @transform_0(%arg0: i32) -> (i32, i32) {
    %c0_i32 = arith.constant 0 : i32
    %c0_i32_0 = arith.constant 0 : i32
    return %arg0, %c0_i32 : i32, i32
  }
  func.func @transform_1(%arg0: i32) -> (i32, i32) {
    %c0_i32 = arith.constant 0 : i32
    %c0_i32_0 = arith.constant 0 : i32
    %c0_i32_1 = arith.constant 0 : i32
    return %c0_i32, %c0_i32_0 : i32, i32
  }
  func.func @transform_2(%arg0: i32) -> (i32, i32) {
    %c0_i32 = arith.constant 0 : i32
    %c0_i32_0 = arith.constant 0 : i32
    %c0_i32_1 = arith.constant 0 : i32
    return %c0_i32, %c0_i32_0 : i32, i32
  }
  func.func @transform_3(%arg0: i32) -> (i32, i32) {
    %c0_i32 = arith.constant 0 : i32
    %c0_i32_0 = arith.constant 0 : i32
    %c0_i32_1 = arith.constant 0 : i32
    return %c0_i32, %c0_i32_0 : i32, i32
  }
  func.func @transform_4(%arg0: i32) -> (i32, i32) {
    %c0_i32 = arith.constant 0 : i32
    %c0_i32_0 = arith.constant 0 : i32
    %c0_i32_1 = arith.constant 0 : i32
    return %c0_i32, %c0_i32_0 : i32, i32
  }
  func.func @transform_5(%arg0: i32) -> (i32, i32) {
    %c0_i32 = arith.constant 0 : i32
    %c0_i32_0 = arith.constant 0 : i32
    return %arg0, %c0_i32 : i32, i32
  }
}

</mosaic_0001>

<bundles_post_ra>
// kernel: tpu_custom_call.1
= control target key start
LH: loop header
LB: loop body
LE: loop exit
PB: predicated region body
PF: predicated region fallthrough
CT: control target
= control target key end

     0   :  { %10 = vsyncpa [#allocation3], 0  ;;  %s534_s0 = inlined_call_operand.hbm [shape: f32[8,32], index: 0, kind: input, shape index: {}]   ;;  %s535_s1 = inlined_call_operand.hbm [shape: bf16[32,128], index: 1, kind: input, shape index: {}]   ;;  %s536_s2 = inlined_call_operand.vmem [shape: f32[1,128], index: 2, kind: input, shape index: {}]   ;;  %s537_s3 = inlined_call_operand.hbm [shape: bf16[128,128], index: 3, kind: input, shape index: {}]   ;;  %s538_s4 = inlined_call_operand.vmem [shape: f32[1,128], index: 4, kind: input, shape index: {}]   ;;  %s539_s5 = inlined_call_operand.hbm [shape: f32[8,128], index: 5, kind: output, shape index: {}]  }
   0x1   :  { %11 = vsyncpa [#allocation6], 0 }
   0x2   :  { %12 = vsyncpa [#allocation4], 0  ;;  %s436_s18 = smov [#allocation5]   ;;  %s342_s22 = scalar_lea.hbm %s535_s1, 256 }
   0x3   :  { %s28_s19 = sshll.u32 %s436_s18, 4  ;;  %p343_p0 = scmp.ne.s32.totalorder %s535_s1, %s342_s22  ;;  %s29_s19 = int_to_ptr.vmem [resolvable:$true] %s28_s19 }
   0x4   :  { %p346_p1 = scmp.lt.u32.totalorder %s342_s22, %s535_s1 }
   0x6   :  { %p348_p2 = pnand %p346_p1, %p343_p0 }
   0x8   :  { %351 = shalt.err (!%p348_p2)
}
   0x9   :  { %s352_s27 = scalar_lea.vmem %s29_s19, 256  ;;  %p357_p4 = scmp.lt.s32.totalorder %s29_s19, %s29_s19 }
   0xa   :  { %p353_p3 = scmp.ne.s32.totalorder %s29_s19, %s352_s27  ;;  %p358_p5 = scmp.lt.s32.totalorder %s352_s27, %s352_s27 }
   0xc   :  { %p359_p6 = por %p358_p5, %p357_p4 }
   0xe   :  { %p360_p7 = pnand %p359_p6, %p353_p3 }
  0x10   :  { %363 = shalt.err (!%p360_p7)
}
  0x11   :  { %s437_s28 = smov 64   ;;  %s438_s29 = smov 4  }
  0x12   :  { %34 = dma.hbm_to_vmem [thread:$0]  %s535_s1, 256, %s29_s19, [#allocation6], %s437_s28, %s437_s28, %s438_s29  }
  0x13   :  { %s439_s7 = smov [#allocation2]   ;;  %s440_s9 = smov [#allocation7]  }
  0x14   :  { %s19_s8 = sshll.u32 %s439_s7, 4  ;;  %s42_s10 = sshll.u32 %s440_s9, 4  ;;  %s20_s8 = int_to_ptr.vmem [resolvable:$true] %s19_s8  ;;  %s43_s10 = int_to_ptr.vmem [resolvable:$true] %s42_s10 }
  0x15   :  { %s364_s13 = scalar_lea.hbm %s534_s0, 128 }
  0x16   :  { %p365_p8 = scmp.ne.s32.totalorder %s534_s0, %s364_s13  ;;  %p368_p9 = scmp.lt.u32.totalorder %s364_s13, %s534_s0 }
  0x18   :  { %p370_p10 = pnand %p368_p9, %p365_p8 }
  0x1a   :  { %373 = shalt.err (!%p370_p10)
}
  0x1b   :  { %s374_s1 = scalar_lea.vmem %s20_s8, 128  ;;  %p379_p12 = scmp.lt.s32.totalorder %s20_s8, %s20_s8 }
  0x1c   :  { %p375_p11 = scmp.ne.s32.totalorder %s20_s8, %s374_s1  ;;  %p380_p13 = scmp.lt.s32.totalorder %s374_s1, %s374_s1 }
  0x1e   :  { %p381_p0 = por %p380_p13, %p379_p12 }
  0x20   :  { %p382_p1 = pnand %p381_p0, %p375_p11 }
  0x22   :  { %385 = shalt.err (!%p382_p1)
}
  0x23   :  { %22 = dma.hbm_to_vmem [thread:$0]  %s534_s0, 128, %s20_s8, [#allocation3]  }
  0x24   :  { %s386_s22 = scalar_lea.hbm %s537_s3, 1024 }
  0x25   :  { %p387_p2 = scmp.ne.s32.totalorder %s537_s3, %s386_s22  ;;  %p390_p3 = scmp.lt.u32.totalorder %s386_s22, %s537_s3 }
  0x27   :  { %p392_p4 = pnand %p390_p3, %p387_p2 }
  0x29   :  { %395 = shalt.err (!%p392_p4)
}
  0x2a   :  { %s396_s27 = scalar_lea.vmem %s43_s10, 1024  ;;  %p401_p6 = scmp.lt.s32.totalorder %s43_s10, %s43_s10 }
  0x2b   :  { %p397_p5 = scmp.ne.s32.totalorder %s43_s10, %s396_s27  ;;  %p402_p7 = scmp.lt.s32.totalorder %s396_s27, %s396_s27 }
  0x2d   :  { %p403_p8 = por %p402_p7, %p401_p6 }
  0x2f   :  { %p404_p9 = pnand %p403_p8, %p397_p5 }
  0x31   :  { %407 = shalt.err (!%p404_p9)
}
  0x32   :  { %48 = dma.hbm_to_vmem [thread:$0]  %s537_s3, 1024, %s43_s10, [#allocation6], %s437_s28, %s437_s28, %s438_s29  }
  0x33   :  { %430 = dma.done.wait [#allocation3], 128  }
  0x34   :  { %431 = vsyncadd [#allocation3], 4294967168 }
  0x35   :  { %432 = dma.done.wait [#allocation6], 1280  }
  0x36   :  { %433 = vsyncadd [#allocation6], 4294966016  ;;  %v441_v0 = vmov 0.0   ;;  %vm442_vm0 = vmmov 0   ;;  %v328_v1 = vld [vmem:[#allocation5] sm:$0xff]   ;;  %v329_v2 = vld [vmem:[#allocation5 + $0x8] sm:$0xff]  }
  0x37   :  { %292 = vmatprep.subr.bf16.mxu0 %v441_v0  ;;  %296 = vmatprep.mubr.msk.bf16.mxu0 %vm442_vm0, %v441_v0  ;;  %v61_v3 = vld [vmem:[#allocation2] sm:$0xff]  ;;  %v330_v4 = vld [vmem:[#allocation7] sm:$0xff]   ;;  %vm86_vm1 = vcmask 261120   ;;  %v332_v7 = vld [vmem:[#allocation7 + $0x10] sm:$0xff]  }
  0x38   :  { %300 = vmatprep.subr.bf16.mxu1 %v441_v0  ;;  %316 = vmatprep.mubr.msk.bf16.mxu1 %vm442_vm0, %v441_v0  ;;  %v62_v5 = vpack.c.bf16 %v61_v3, %v61_v3  ;;  %v331_v6 = vld [vmem:[#allocation7 + $0x8] sm:$0xff]   ;;  %v333_v8 = vld [vmem:[#allocation7 + $0x18] sm:$0xff]   ;;  %v334_v9 = vld [vmem:[#allocation7 + $0x20] sm:$0xff]  }
  0x39   :  { %293 = vmatpush3.bf16.msra.mxu0 %v328_v1  ;;  %301 = vmatpush3.bf16.msra.mxu1 %v330_v4  ;;  %v335_v10 = vld [vmem:[#allocation7 + $0x28] sm:$0xff]   ;;  %v336_v11 = vld [vmem:[#allocation7 + $0x30] sm:$0xff]   ;;  %v337_v12 = vld [vmem:[#allocation7 + $0x38] sm:$0xff]  }
  0x3a   :  { %294 = vmatprep.subr.bf16.mxu0 %v441_v0  ;;  %302 = vmatprep.subr.bf16.mxu1 %v441_v0  ;;  %v266_v13 = vld [vmem:[%s536_s2] ss:$0 sm:$0xff]  ;;  %s443_s2 = smov [#allocation8]  }
  0x3b   :  { %v270_v21 = vld [vmem:[%s538_s4] ss:$0 sm:$0xff]  ;;  %s256_s7 = sshll.u32 %s443_s2, 4  ;;  %s257_s7 = int_to_ptr.vmem [resolvable:$true] %s256_s7 }
  0x3c   :  { %s408_s8 = scalar_lea.vmem %s257_s7, 128  ;;  %p413_p11 = scmp.lt.s32.totalorder %s257_s7, %s257_s7 }
  0x3d   :  { %295 = vmatpush3.bf16.msra.mxu0 %v329_v2  ;;  %303 = vmatpush3.bf16.msra.mxu1 %v331_v6  ;;  %p409_p10 = scmp.ne.s32.totalorder %s257_s7, %s408_s8  ;;  %p414_p12 = scmp.lt.s32.totalorder %s408_s8, %s408_s8 }
  0x3e   :  { %304 = vmatprep.subr.bf16.mxu1 %v441_v0 }
  0x3f   :  { %p415_p13 = por %p414_p12, %p413_p11 }
  0x40   :  { %297 = vmatmul.mubr.msk.bf16.vlgmr.msra.gmra.mrb[0].mxu0 %vm86_vm1, %v62_v5 }
  0x41   :  { %305 = vmatpush3.bf16.msra.mxu1 %v332_v7  ;;  %p416_p0 = pnand %p415_p13, %p409_p10 }
  0x42   :  { %306 = vmatprep.subr.bf16.mxu1 %v441_v0 }
  0x45   :  { %307 = vmatpush3.bf16.msra.mxu1 %v333_v8 }
  0x46   :  { %308 = vmatprep.subr.bf16.mxu1 %v441_v0 }
  0x49   :  { %309 = vmatpush3.bf16.msra.mxu1 %v334_v9 }
  0x4a   :  { %310 = vmatprep.subr.bf16.mxu1 %v441_v0 }
  0x4d   :  { %311 = vmatpush3.bf16.msra.mxu1 %v335_v10 }
  0x4e   :  { %312 = vmatprep.subr.bf16.mxu1 %v441_v0 }
  0x51   :  { %313 = vmatpush3.bf16.msra.mxu1 %v336_v11 }
  0x52   :  { %314 = vmatprep.subr.bf16.mxu1 %v441_v0 }
  0x55   :  { %315 = vmatpush3.bf16.msra.mxu1 %v337_v12 }
 0x113   :  { %v124_v14 = vpop.f32.mrb[0].mxu0 }
 0x114   :  { %v125_v15 = vadd.f32 %v266_v13, %v124_v14  ;;  %v298_v16 = vpop.f32.mrb[1].mxu0 }
 0x115   :  { %v127_v17 = vpop.f32.mrb[2].mxu0 }
 0x116   :  { %v130_v18 = vmax.f32 %v125_v15, 0.0  ;;  %v299_v19 = vpop.f32.mrb[3].mxu0 }
 0x118   :  { %v131_v20 = vpack.c.bf16 %v130_v18, %v130_v18 }
 0x11a   :  { %317 = vmatmul.mubr.bf16.vlgmr.msra.gmra.mrb[0].mxu1 %v131_v20 }
 0x1ed   :  { %v237_v22 = vpop.f32.mrb[0].mxu1 }
 0x1ee   :  { %v238_v23 = vadd.f32 %v270_v21, %v237_v22  ;;  %v318_v24 = vpop.f32.mrb[1].mxu1 }
 0x1ef   :  { %v240_v25 = vpop.f32.mrb[2].mxu1 }
 0x1f0   :  { %v279_v26 = vmul.f32 -1.442695, %v238_v23  ;;  %v319_v27 = vpop.f32.mrb[3].mxu1 }
 0x1f2   :  { %338 = vpow2.f32 %v279_v26 }
 0x1fc   :  { %v339_v28 = vpop.eup %338 }
 0x1fd   :  { %v246_v29 = vadd.f32 1.0, %v339_v28 }
 0x1ff   :  { %340 = vrcp.f32 %v246_v29 }
 0x209   :  { %v341_v30 = vpop.eup %340 }
 0x20a   :  { %249 = vst [vmem:[#allocation8] sm:$0xff] %v341_v30 }
 0x20b   :  { %419 = shalt.err (!%p416_p0)
}
 0x20c   :  { %s420_s10 = scalar_lea.hbm %s539_s5, 128 }
 0x20d   :  { %p421_p1 = scmp.ne.s32.totalorder %s539_s5, %s420_s10  ;;  %p424_p2 = scmp.lt.u32.totalorder %s420_s10, %s539_s5 }
 0x20f   :  { %p426_p3 = pnand %p424_p2, %p421_p1 }
 0x211   :  { %429 = shalt.err (!%p426_p3)
}
 0x212   :  { %259 = dma.vmem_to_hbm [thread:$0]  %s257_s7, 128, %s539_s5, [#allocation4]  }
 0x213   :  { %434 = dma.done.wait [#allocation4], 128  }
 0x214   :  { %435 = vsyncadd [#allocation4], 4294967168 }
 0x215   :  { %263 = vsyncpa [#allocation3], 1 }
 0x216   :  { %264 = vsyncpa [#allocation6], 1 }
 0x217   :  { %265 = vsyncpa [#allocation4], 1 }

// kernel: tpu_custom_call.1
= control target key start
LH: loop header
LB: loop body
LE: loop exit
PB: predicated region body
PF: predicated region fallthrough
CT: control target
= control target key end

     0   :  { %10 = vsyncpa [#allocation3], 0  ;;  %s534_s0 = inlined_call_operand.hbm [shape: f32[8,32], index: 0, kind: input, shape index: {}]   ;;  %s535_s1 = inlined_call_operand.hbm [shape: bf16[32,128], index: 1, kind: input, shape index: {}]   ;;  %s536_s2 = inlined_call_operand.vmem [shape: f32[1,128], index: 2, kind: input, shape index: {}]   ;;  %s537_s3 = inlined_call_operand.hbm [shape: bf16[128,128], index: 3, kind: input, shape index: {}]   ;;  %s538_s4 = inlined_call_operand.vmem [shape: f32[1,128], index: 4, kind: input, shape index: {}]   ;;  %s539_s5 = inlined_call_operand.hbm [shape: f32[8,128], index: 5, kind: output, shape index: {}]  }
   0x1   :  { %11 = vsyncpa [#allocation6], 0 }
   0x2   :  { %12 = vsyncpa [#allocation4], 0  ;;  %s436_s18 = smov [#allocation5]   ;;  %s342_s22 = scalar_lea.hbm %s535_s1, 256 }
   0x3   :  { %s28_s19 = sshll.u32 %s436_s18, 4  ;;  %p343_p0 = scmp.ne.s32.totalorder %s535_s1, %s342_s22  ;;  %s29_s19 = int_to_ptr.vmem [resolvable:$true] %s28_s19 }
   0x4   :  { %p346_p1 = scmp.lt.u32.totalorder %s342_s22, %s535_s1 }
   0x6   :  { %p348_p2 = pnand %p346_p1, %p343_p0 }
   0x8   :  { %351 = shalt.err (!%p348_p2)
}
   0x9   :  { %s352_s27 = scalar_lea.vmem %s29_s19, 256  ;;  %p357_p4 = scmp.lt.s32.totalorder %s29_s19, %s29_s19 }
   0xa   :  { %p353_p3 = scmp.ne.s32.totalorder %s29_s19, %s352_s27  ;;  %p358_p5 = scmp.lt.s32.totalorder %s352_s27, %s352_s27 }
   0xc   :  { %p359_p6 = por %p358_p5, %p357_p4 }
   0xe   :  { %p360_p7 = pnand %p359_p6, %p353_p3 }
  0x10   :  { %363 = shalt.err (!%p360_p7)
}
  0x11   :  { %s437_s28 = smov 64   ;;  %s438_s29 = smov 4  }
  0x12   :  { %34 = dma.hbm_to_vmem [thread:$0]  %s535_s1, 256, %s29_s19, [#allocation6], %s437_s28, %s437_s28, %s438_s29  }
  0x13   :  { %s439_s7 = smov [#allocation2]   ;;  %s440_s9 = smov [#allocation7]  }
  0x14   :  { %s19_s8 = sshll.u32 %s439_s7, 4  ;;  %s42_s10 = sshll.u32 %s440_s9, 4  ;;  %s20_s8 = int_to_ptr.vmem [resolvable:$true] %s19_s8  ;;  %s43_s10 = int_to_ptr.vmem [resolvable:$true] %s42_s10 }
  0x15   :  { %s364_s13 = scalar_lea.hbm %s534_s0, 128 }
  0x16   :  { %p365_p8 = scmp.ne.s32.totalorder %s534_s0, %s364_s13  ;;  %p368_p9 = scmp.lt.u32.totalorder %s364_s13, %s534_s0 }
  0x18   :  { %p370_p10 = pnand %p368_p9, %p365_p8 }
  0x1a   :  { %373 = shalt.err (!%p370_p10)
}
  0x1b   :  { %s374_s1 = scalar_lea.vmem %s20_s8, 128  ;;  %p379_p12 = scmp.lt.s32.totalorder %s20_s8, %s20_s8 }
  0x1c   :  { %p375_p11 = scmp.ne.s32.totalorder %s20_s8, %s374_s1  ;;  %p380_p13 = scmp.lt.s32.totalorder %s374_s1, %s374_s1 }
  0x1e   :  { %p381_p0 = por %p380_p13, %p379_p12 }
  0x20   :  { %p382_p1 = pnand %p381_p0, %p375_p11 }
  0x22   :  { %385 = shalt.err (!%p382_p1)
}
  0x23   :  { %22 = dma.hbm_to_vmem [thread:$0]  %s534_s0, 128, %s20_s8, [#allocation3]  }
  0x24   :  { %s386_s22 = scalar_lea.hbm %s537_s3, 1024 }
  0x25   :  { %p387_p2 = scmp.ne.s32.totalorder %s537_s3, %s386_s22  ;;  %p390_p3 = scmp.lt.u32.totalorder %s386_s22, %s537_s3 }
  0x27   :  { %p392_p4 = pnand %p390_p3, %p387_p2 }
  0x29   :  { %395 = shalt.err (!%p392_p4)
}
  0x2a   :  { %s396_s27 = scalar_lea.vmem %s43_s10, 1024  ;;  %p401_p6 = scmp.lt.s32.totalorder %s43_s10, %s43_s10 }
  0x2b   :  { %p397_p5 = scmp.ne.s32.totalorder %s43_s10, %s396_s27  ;;  %p402_p7 = scmp.lt.s32.totalorder %s396_s27, %s396_s27 }
  0x2d   :  { %p403_p8 = por %p402_p7, %p401_p6 }
  0x2f   :  { %p404_p9 = pnand %p403_p8, %p397_p5 }
  0x31   :  { %407 = shalt.err (!%p404_p9)
}
  0x32   :  { %48 = dma.hbm_to_vmem [thread:$0]  %s537_s3, 1024, %s43_s10, [#allocation6], %s437_s28, %s437_s28, %s438_s29  }
  0x33   :  { %430 = dma.done.wait [#allocation3], 128  }
  0x34   :  { %431 = vsyncadd [#allocation3], 4294967168 }
  0x35   :  { %432 = dma.done.wait [#allocation6], 1280  }
  0x36   :  { %433 = vsyncadd [#allocation6], 4294966016  ;;  %v441_v0 = vmov 0.0   ;;  %vm442_vm0 = vmmov 0   ;;  %v328_v1 = vld [vmem:[#allocation5] sm:$0xff]   ;;  %v329_v2 = vld [vmem:[#allocation5 + $0x8] sm:$0xff]  }
  0x37   :  { %292 = vmatprep.subr.bf16.mxu0 %v441_v0  ;;  %296 = vmatprep.mubr.msk.bf16.mxu0 %vm442_vm0, %v441_v0  ;;  %v61_v3 = vld [vmem:[#allocation2] sm:$0xff]  ;;  %v330_v4 = vld [vmem:[#allocation7] sm:$0xff]   ;;  %vm86_vm1 = vcmask 261120   ;;  %v332_v7 = vld [vmem:[#allocation7 + $0x10] sm:$0xff]  }
  0x38   :  { %300 = vmatprep.subr.bf16.mxu1 %v441_v0  ;;  %316 = vmatprep.mubr.msk.bf16.mxu1 %vm442_vm0, %v441_v0  ;;  %v62_v5 = vpack.c.bf16 %v61_v3, %v61_v3  ;;  %v331_v6 = vld [vmem:[#allocation7 + $0x8] sm:$0xff]   ;;  %v333_v8 = vld [vmem:[#allocation7 + $0x18] sm:$0xff]   ;;  %v334_v9 = vld [vmem:[#allocation7 + $0x20] sm:$0xff]  }
  0x39   :  { %293 = vmatpush3.bf16.msra.mxu0 %v328_v1  ;;  %301 = vmatpush3.bf16.msra.mxu1 %v330_v4  ;;  %v335_v10 = vld [vmem:[#allocation7 + $0x28] sm:$0xff]   ;;  %v336_v11 = vld [vmem:[#allocation7 + $0x30] sm:$0xff]   ;;  %v337_v12 = vld [vmem:[#allocation7 + $0x38] sm:$0xff]  }
  0x3a   :  { %294 = vmatprep.subr.bf16.mxu0 %v441_v0  ;;  %302 = vmatprep.subr.bf16.mxu1 %v441_v0  ;;  %v266_v13 = vld [vmem:[%s536_s2] ss:$0 sm:$0xff]  ;;  %s443_s2 = smov [#allocation8]  }
  0x3b   :  { %v270_v21 = vld [vmem:[%s538_s4] ss:$0 sm:$0xff]  ;;  %s256_s7 = sshll.u32 %s443_s2, 4  ;;  %s257_s7 = int_to_ptr.vmem [resolvable:$true] %s256_s7 }
  0x3c   :  { %s408_s8 = scalar_lea.vmem %s257_s7, 128  ;;  %p413_p11 = scmp.lt.s32.totalorder %s257_s7, %s257_s7 }
  0x3d   :  { %295 = vmatpush3.bf16.msra.mxu0 %v329_v2  ;;  %303 = vmatpush3.bf16.msra.mxu1 %v331_v6  ;;  %p409_p10 = scmp.ne.s32.totalorder %s257_s7, %s408_s8  ;;  %p414_p12 = scmp.lt.s32.totalorder %s408_s8, %s408_s8 }
  0x3e   :  { %304 = vmatprep.subr.bf16.mxu1 %v441_v0 }
  0x3f   :  { %p415_p13 = por %p414_p12, %p413_p11 }
  0x40   :  { %297 = vmatmul.mubr.msk.bf16.vlgmr.msra.gmra.mrb[0].mxu0 %vm86_vm1, %v62_v5 }
  0x41   :  { %305 = vmatpush3.bf16.msra.mxu1 %v332_v7  ;;  %p416_p0 = pnand %p415_p13, %p409_p10 }
  0x42   :  { %306 = vmatprep.subr.bf16.mxu1 %v441_v0 }
  0x45   :  { %307 = vmatpush3.bf16.msra.mxu1 %v333_v8 }
  0x46   :  { %308 = vmatprep.subr.bf16.mxu1 %v441_v0 }
  0x49   :  { %309 = vmatpush3.bf16.msra.mxu1 %v334_v9 }
  0x4a   :  { %310 = vmatprep.subr.bf16.mxu1 %v441_v0 }
  0x4d   :  { %311 = vmatpush3.bf16.msra.mxu1 %v335_v10 }
  0x4e   :  { %312 = vmatprep.subr.bf16.mxu1 %v441_v0 }
  0x51   :  { %313 = vmatpush3.bf16.msra.mxu1 %v336_v11 }
  0x52   :  { %314 = vmatprep.subr.bf16.mxu1 %v441_v0 }
  0x55   :  { %315 = vmatpush3.bf16.msra.mxu1 %v337_v12 }
 0x113   :  { %v124_v14 = vpop.f32.mrb[0].mxu0 }
 0x114   :  { %v125_v15 = vadd.f32 %v266_v13, %v124_v14  ;;  %v298_v16 = vpop.f32.mrb[1].mxu0 }
 0x115   :  { %v127_v17 = vpop.f32.mrb[2].mxu0 }
 0x116   :  { %v130_v18 = vmax.f32 %v125_v15, 0.0  ;;  %v299_v19 = vpop.f32.mrb[3].mxu0 }
 0x118   :  { %v131_v20 = vpack.c.bf16 %v130_v18, %v130_v18 }
 0x11a   :  { %317 = vmatmul.mubr.bf16.vlgmr.msra.gmra.mrb[0].mxu1 %v131_v20 }
 0x1ed   :  { %v237_v22 = vpop.f32.mrb[0].mxu1 }
 0x1ee   :  { %v238_v23 = vadd.f32 %v270_v21, %v237_v22  ;;  %v318_v24 = vpop.f32.mrb[1].mxu1 }
 0x1ef   :  { %v240_v25 = vpop.f32.mrb[2].mxu1 }
 0x1f0   :  { %v279_v26 = vmul.f32 -1.442695, %v238_v23  ;;  %v319_v27 = vpop.f32.mrb[3].mxu1 }
 0x1f2   :  { %338 = vpow2.f32 %v279_v26 }
 0x1fc   :  { %v339_v28 = vpop.eup %338 }
 0x1fd   :  { %v246_v29 = vadd.f32 1.0, %v339_v28 }
 0x1ff   :  { %340 = vrcp.f32 %v246_v29 }
 0x209   :  { %v341_v30 = vpop.eup %340 }
 0x20a   :  { %249 = vst [vmem:[#allocation8] sm:$0xff] %v341_v30 }
 0x20b   :  { %419 = shalt.err (!%p416_p0)
}
 0x20c   :  { %s420_s10 = scalar_lea.hbm %s539_s5, 128 }
 0x20d   :  { %p421_p1 = scmp.ne.s32.totalorder %s539_s5, %s420_s10  ;;  %p424_p2 = scmp.lt.u32.totalorder %s420_s10, %s539_s5 }
 0x20f   :  { %p426_p3 = pnand %p424_p2, %p421_p1 }
 0x211   :  { %429 = shalt.err (!%p426_p3)
}
 0x212   :  { %259 = dma.vmem_to_hbm [thread:$0]  %s257_s7, 128, %s539_s5, [#allocation4]  }
 0x213   :  { %434 = dma.done.wait [#allocation4], 128  }
 0x214   :  { %435 = vsyncadd [#allocation4], 4294967168 }
 0x215   :  { %263 = vsyncpa [#allocation3], 1 }
 0x216   :  { %264 = vsyncpa [#allocation6], 1 }
 0x217   :  { %265 = vsyncpa [#allocation4], 1 }

</bundles_post_ra>
